<compile_context>
chip_gen: v7x
topology: tpu7x:2x2x1
jax: 0.10.0
libtpu: 0.0.40
codegen_flags: <defaults>
</compile_context>

<pallas_src>
import numpy as np
import jax
import jax.numpy as jnp
from jax.experimental import pallas as pl
from jax.experimental.pallas import tpu as pltpu


def _round_up(x, m):
    return (x + m - 1) // m * m


def _pick_tile(total, candidates):
    for c in candidates:
        if c <= total and total % c == 0:
            return c
    return total


def _mosaic_params(block_bytes, semantics):
    # explicit scoped-VMEM limit from the computed footprint (2x for double buffers
    # already included by caller), capped below v7x's 64 MiB physical VMEM.
    limit = int(min(64 << 20, max(16 << 20, 2 * block_bytes + (2 << 20))))
    return pltpu.CompilerParams(dimension_semantics=semantics,
                                vmem_limit_bytes=limit)


# ------------------- kernel 1: hoisted input projection ----------------------
def input_projection(x_flat, w_ih, b):
    """xproj[T*B_pad, 4H] = x_flat @ W_ih + b, stored bf16, row-tiled grid."""
    R, E = x_flat.shape
    H4 = w_ih.shape[1]
    tr = _pick_tile(R, (512, 256, 128, 64, 32, 16, 8))

    def kernel(x_ref, w_ref, b_ref, o_ref):
        o_ref[...] = (jnp.dot(x_ref[...], w_ref[...],
                              preferred_element_type=jnp.float32)
                      + b_ref[...]).astype(o_ref.dtype)

    block_bytes = (tr * E * 2 + E * H4 * 2 + H4 * 4 + tr * H4 * 2) * 2
    return pl.pallas_call(
        kernel,
        out_shape=jax.ShapeDtypeStruct((R, H4), jnp.bfloat16),
        grid_spec=pltpu.PrefetchScalarGridSpec(
            num_scalar_prefetch=0,
            grid=(R // tr,),
            in_specs=[
                pl.BlockSpec((tr, E), lambda i: (i, 0)),     # x row tile
                pl.BlockSpec((E, H4), lambda i: (0, 0)),     # W_ih (bf16, invariant)
                pl.BlockSpec((1, H4), lambda i: (0, 0)),     # bias (b_ih + b_hh)
            ],
            out_specs=pl.BlockSpec((tr, H4), lambda i: (i, 0)),
        ),
        compiler_params=_mosaic_params(block_bytes, ("parallel",)),
    )(x_flat, w_ih, b)


# -------------------------- kernel 2: LSTM recurrence -------------------------
def lstm_recurrence(xproj, w_hh, *, T, B_pad, n_bchunks):
    """Streamed LSTM cell over grid (batch_chunks, T); h/c persist in VMEM scratch.

    xproj rows are laid out time-major: row (t * B_pad + b).  Returns the hidden
    states as a [T*B_pad, H] bf16 slab (consumed by the packed output Linear).
    """
    R, H4 = xproj.shape
    H = w_hh.shape[0]
    B_chunk = B_pad // n_bchunks

    def kernel(xp_ref, whh_ref, hid_ref, h_scr, c_scr):
        Hh = whh_ref.shape[0]

        @pl.when(pl.program_id(1) == 0)                      # new batch chunk
        def _():
            h_scr[...] = jnp.zeros_like(h_scr)
            c_scr[...] = jnp.zeros_like(c_scr)

        # only the recurrent matmul is on the serial path (bf16 operands, f32 acc)
        gates = xp_ref[...] + jnp.dot(h_scr[...].astype(jnp.bfloat16),
                                      whh_ref[...],
                                      preferred_element_type=jnp.float32)

        # gate slices land on 128-lane boundaries (H padded to 128)
        i_g = jax.nn.sigmoid(gates[:, 0:Hh])
        f_g = jax.nn.sigmoid(gates[:, Hh:2 * Hh])
        g_g = jnp.tanh(gates[:, 2 * Hh:3 * Hh])
        o_g = jax.nn.sigmoid(gates[:, 3 * Hh:4 * Hh])

        c_new = f_g * c_scr[...] + i_g * g_g
        h_new = o_g * jnp.tanh(c_new)
        c_scr[...] = c_new
        h_scr[...] = h_new
        hid_ref[...] = h_new.astype(hid_ref.dtype)           # lane-dense bf16 store

    block_bytes = ((B_chunk * H4 * 2) + (H * H4 * 2) + (B_chunk * H * 2)) * 2 \
                  + 2 * (B_chunk * H * 4)
    return pl.pallas_call(
        kernel,
        out_shape=jax.ShapeDtypeStruct((R, H), jnp.bfloat16),
        grid_spec=pltpu.PrefetchScalarGridSpec(
            num_scalar_prefetch=0,
            grid=(n_bchunks, T),
            in_specs=[
                pl.BlockSpec((B_chunk, H4),
                             lambda bc, t: (t * n_bchunks + bc, 0)),   # xproj block
                pl.BlockSpec((H, H4), lambda bc, t: (0, 0)),           # W_hh (invariant)
            ],
            out_specs=pl.BlockSpec((B_chunk, H),
                                   lambda bc, t: (t * n_bchunks + bc, 0)),
            scratch_shapes=[
                pltpu.VMEM((B_chunk, H), jnp.float32),   # h state
                pltpu.VMEM((B_chunk, H), jnp.float32),   # c state
            ],
        ),
        compiler_params=_mosaic_params(block_bytes, ("parallel", "arbitrary")),
    )(xproj, w_hh)


# --------------------- kernel 3: packed output Linear -------------------------
def packed_linear(h_packed, w_lin, b_lin):
    """[N_pad, H] x [H, V] + b, tiled over (packed rows, vocab) — both parallel."""
    N_pad, H = h_packed.shape
    V_pad = w_lin.shape[1]
    tn = _pick_tile(N_pad, (256, 128, 64, 32, 16, 8))
    tv = _pick_tile(V_pad, (2048, 1024, 512, 256, 128))

    def kernel(h_ref, w_ref, b_ref, o_ref):
        o_ref[...] = (jnp.dot(h_ref[...], w_ref[...],
                              preferred_element_type=jnp.float32)
                      + b_ref[...]).astype(o_ref.dtype)

    block_bytes = (tn * H * 2 + H * tv * 2 + tv * 4 + tn * tv * 4) * 2
    return pl.pallas_call(
        kernel,
        out_shape=jax.ShapeDtypeStruct((N_pad, V_pad), jnp.float32),
        grid_spec=pltpu.PrefetchScalarGridSpec(
            num_scalar_prefetch=0,
            grid=(N_pad // tn, V_pad // tv),
            in_specs=[
                pl.BlockSpec((tn, H), lambda i, j: (i, 0)),   # packed hidden rows
                pl.BlockSpec((H, tv), lambda i, j: (0, j)),   # W_lin vocab tile
                pl.BlockSpec((1, tv), lambda i, j: (0, j)),   # b_lin vocab tile
            ],
            out_specs=pl.BlockSpec((tn, tv), lambda i, j: (i, j)),
        ),
        compiler_params=_mosaic_params(block_bytes, ("parallel", "parallel")),
    )(h_packed, w_lin, b_lin)


# ---------------------------- parameter padding ------------------------------
def _prepare_padded_params(params):
    """Pad per-gate hidden dim / lane dims to TPU tiles; cast MXU operands to bf16."""
    E, _ = params["w_ih"].shape
    H = params["w_hh"].shape[0]
    V = params["w_lin_t"].shape[1]
    E_pad = _round_up(E, 128)
    H_pad = _round_up(H, 128)
    V_pad = _round_up(V, 128)

    w_ih = params["w_ih"].reshape(E, 4, H)
    w_ih = jnp.pad(w_ih, ((0, E_pad - E), (0, 0), (0, H_pad - H)))
    w_ih = w_ih.reshape(E_pad, 4 * H_pad)

    w_hh = params["w_hh"].reshape(H, 4, H)
    w_hh = jnp.pad(w_hh, ((0, H_pad - H), (0, 0), (0, H_pad - H)))
    w_hh = w_hh.reshape(H_pad, 4 * H_pad)

    b = params["lstm_b"].reshape(1, 4, H)
    b = jnp.pad(b, ((0, 0), (0, 0), (0, H_pad - H))).reshape(1, 4 * H_pad)

    w_lin = jnp.pad(params["w_lin_t"], ((0, H_pad - H), (0, V_pad - V)))
    b_lin = jnp.pad(params["b_lin"], ((0, 0), (0, V_pad - V)))

    return dict(w_ih=w_ih.astype(jnp.bfloat16),
                w_hh=w_hh.astype(jnp.bfloat16),
                b=b.astype(jnp.float32),
                w_lin=w_lin.astype(jnp.bfloat16),
                b_lin=b_lin.astype(jnp.float32),
                dims=(E, H, V, E_pad, H_pad, V_pad))


# ------------------------------ Decoder forward ------------------------------
def decoder_forward(params, features, captions, lengths):
    """features: [B, E] f32, captions: [B, L] int32, lengths: descending ints."""
    B, E = features.shape
    L = captions.shape[1]
    T = L                                    # L-1 embedding steps + 1 feature step
    lengths_np = np.asarray(lengths, dtype=np.int32)

    padded = _prepare_padded_params(params)
    _, H, V, E_pad, H_pad, V_pad = padded["dims"]
    B_pad = _round_up(B, 16)                 # bf16 packs 16 sublanes per vreg
    n_bchunks = 2 if (B_pad % 32 == 0) else 1   # v7x megacore batch split

    # embedding lookup + concat (plain JAX glue: gather)
    cap_trim = captions[:, :-1]                                     # [B, L-1]
    emb = jnp.take(params["embed"], cap_trim, axis=0)               # [B, L-1, E]
    inputs = jnp.concatenate([features[:, None, :], emb], axis=1)   # [B, T, E]

    # time-major, padded, flattened, bf16 for the MXU
    x_tbe = jnp.transpose(inputs, (1, 0, 2))                        # [T, B, E]
    x_tbe = jnp.pad(x_tbe, ((0, 0), (0, B_pad - B), (0, E_pad - E)))
    x_flat = x_tbe.reshape(T * B_pad, E_pad).astype(jnp.bfloat16)

    # 1) hoisted input projection (one big pipelined matmul)
    xproj = input_projection(x_flat, padded["w_ih"], padded["b"])   # [T*B_pad, 4H] bf16

    # 2) streamed LSTM recurrence; hidden states to HBM as a bf16 slab
    hiddens = lstm_recurrence(xproj, padded["w_hh"], T=T, B_pad=B_pad,
                              n_bchunks=n_bchunks)                  # [T*B_pad, H] bf16

    # pack_padded_sequence ordering (batch_first, enforce_sorted=True):
    #   for t in range(T): for b ascending with lengths[b] > t
    t_idx, b_idx = np.nonzero(lengths_np[None, :] > np.arange(T)[:, None])
    N = int(t_idx.shape[0])
    flat_idx = jnp.asarray(t_idx * B_pad + b_idx, dtype=jnp.int32)  # [N]
    h_packed = jnp.take(hiddens, flat_idx, axis=0)                  # [N, H] bf16

    tn = min(128, _round_up(N, 16))
    N_pad = _round_up(N, tn)
    h_packed = jnp.pad(h_packed, ((0, N_pad - N), (0, 0)))

    # 3) one batched output Linear over only the valid packed rows, vocab-tiled
    logits = packed_linear(h_packed, padded["w_lin"], padded["b_lin"])  # [N_pad, V_pad]
    return logits[:N, :V]


# --------------------------- reference (pure JAX) ----------------------------
def decoder_forward_ref(params, features, captions, lengths):
    B, E = features.shape
    H = params["w_hh"].shape[0]
    cap_trim = captions[:, :-1]
    emb = jnp.take(params["embed"], cap_trim, axis=0)
    inputs = jnp.concatenate([features[:, None, :], emb], axis=1)
    T = inputs.shape[1]
    h = jnp.zeros((B, H), jnp.float32)
    c = jnp.zeros((B, H), jnp.float32)
    hs = []
    for t in range(T):
        g = inputs[:, t, :] @ params["w_ih"] + h @ params["w_hh"] + params["lstm_b"]
        i_g = jax.nn.sigmoid(g[:, 0:H])
        f_g = jax.nn.sigmoid(g[:, H:2 * H])
        g_g = jnp.tanh(g[:, 2 * H:3 * H])
        o_g = jax.nn.sigmoid(g[:, 3 * H:4 * H])
        c = f_g * c + i_g * g_g
        h = o_g * jnp.tanh(c)
        hs.append(h)
    hiddens = jnp.stack(hs, axis=0)
    packed = []
    for t in range(T):
        for b in range(B):
            if lengths[b] > t:
                packed.append(hiddens[t, b])
    packed = jnp.stack(packed, axis=0)
    return packed @ params["w_lin_t"] + params["b_lin"]


# ------------------------------------ main ------------------------------------
if __name__ == "__main__":
    B, L, E, H, V = 2, 8, 32, 32, 128
    lengths = [8, 6]  # descending (enforce_sorted=True)

    key = jax.random.PRNGKey(0)
    keys = jax.random.split(key, 8)
    bound = 1.0 / np.sqrt(H)

    params = {
        # Embedding table [V, E]
        "embed": jax.random.normal(keys[0], (V, E), jnp.float32) * 0.1,
        # LSTM weights, stored transposed for x @ W: gate order (i, f, g, o)
        "w_ih": jax.random.uniform(keys[1], (E, 4 * H), jnp.float32, -bound, bound),
        "w_hh": jax.random.uniform(keys[2], (H, 4 * H), jnp.float32, -bound, bound),
        "lstm_b": (jax.random.uniform(keys[3], (1, 4 * H), jnp.float32, -bound, bound)
                   + jax.random.uniform(keys[4], (1, 4 * H), jnp.float32, -bound, bound)),
        # Linear: PyTorch weight is [V, H]; store transposed [H, V]
        "w_lin_t": jax.random.uniform(keys[5], (H, V), jnp.float32, -bound, bound),
        "b_lin": jax.random.uniform(keys[6], (1, V), jnp.float32, -bound, bound),
    }

    features = jax.random.normal(keys[7], (B, E), jnp.float32)
    captions = jax.random.randint(jax.random.PRNGKey(1), (B, L), 0, V, jnp.int32)

    out = decoder_forward(params, features, captions, lengths)
    out = jax.block_until_ready(out)

    ref = decoder_forward_ref(params, features, captions, lengths)
    assert out.shape == (sum(lengths), V), out.shape
    # bf16 MXU operands (f32 accumulation) -> relaxed tolerance vs. f32 reference
    np.testing.assert_allclose(np.asarray(out), np.asarray(ref), rtol=5e-2, atol=5e-2)

    print("KERNEL_OK")
</pallas_src>

<mosaic_0001>
module attributes {stable_mosaic.version = 11 : i64} {
  func.func @kernel(%arg0: i32, %arg1: memref<128x128xbf16, #tpu.memory_space<vmem>>, %arg2: memref<128x512xbf16, #tpu.memory_space<vmem>>, %arg3: memref<1x512xf32, #tpu.memory_space<vmem>>, %arg4: memref<128x512xbf16, #tpu.memory_space<vmem>>) attributes {dimension_semantics = [#tpu.dimension_semantics<parallel>], iteration_bounds = array<i64: 1>, scalar_prefetch = 0 : i64, scratch_operands = 0 : i64, tpu.core_type = #tpu.core_type<tc>, window_params = [{transform_indices = @transform_0, window_bounds = array<i64: 128, 128>}, {pipeline_mode = #tpu.pipeline_mode<synchronous>, transform_indices = @transform_1, window_bounds = array<i64: 128, 512>}, {pipeline_mode = #tpu.pipeline_mode<synchronous>, transform_indices = @transform_2, window_bounds = array<i64: 1, 512>}, {transform_indices = @transform_3, window_bounds = array<i64: 128, 512>}]} {
    %c0 = arith.constant 0 : index
    %c0_0 = arith.constant 0 : index
    %0 = vector.load %arg1[%c0, %c0_0] : memref<128x128xbf16, #tpu.memory_space<vmem>>, vector<128x128xbf16>
    %c0_1 = arith.constant 0 : index
    %c0_2 = arith.constant 0 : index
    %1 = vector.load %arg2[%c0_1, %c0_2] : memref<128x512xbf16, #tpu.memory_space<vmem>>, vector<128x512xbf16>
    %cst = arith.constant dense<0.000000e+00> : vector<128x512xf32>
    %2 = tpu.matmul %0, %1, %cst {dimension_numbers = #tpu.dot_dimension_numbers<[1], [0], [0], [1], [0, 0, 1, 1], [], []>} : vector<128x128xbf16>, vector<128x512xbf16>, vector<128x512xf32> -> vector<128x512xf32>
    %c0_3 = arith.constant 0 : index
    %c0_4 = arith.constant 0 : index
    %3 = vector.load %arg3[%c0_3, %c0_4] : memref<1x512xf32, #tpu.memory_space<vmem>>, vector<1x512xf32>
    %4 = vector.broadcast %3 : vector<1x512xf32> to vector<128x512xf32>
    %5 = arith.addf %2, %4 : vector<128x512xf32>
    %6 = arith.truncf %5 : vector<128x512xf32> to vector<128x512xbf16>
    %c0_5 = arith.constant 0 : index
    %c0_6 = arith.constant 0 : index
    %7 = vector.load %arg4[%c0_5, %c0_6] : memref<128x512xbf16, #tpu.memory_space<vmem>>, vector<128x512xbf16>
    tpu.vector_store %arg4[%c0_5, %c0_6], %6 {strides = array<i32>} : memref<128x512xbf16, #tpu.memory_space<vmem>>, vector<128x512xbf16>,
    return
  }
  func.func @transform_0(%arg0: i32) -> (i32, i32) {
    %c0_i32 = arith.constant 0 : i32
    %c0_i32_0 = arith.constant 0 : i32
    return %arg0, %c0_i32 : i32, i32
  }
  func.func @transform_1(%arg0: i32) -> (i32, i32) {
    %c0_i32 = arith.constant 0 : i32
    %c0_i32_0 = arith.constant 0 : i32
    %c0_i32_1 = arith.constant 0 : i32
    return %c0_i32, %c0_i32_0 : i32, i32
  }
  func.func @transform_2(%arg0: i32) -> (i32, i32) {
    %c0_i32 = arith.constant 0 : i32
    %c0_i32_0 = arith.constant 0 : i32
    %c0_i32_1 = arith.constant 0 : i32
    return %c0_i32, %c0_i32_0 : i32, i32
  }
  func.func @transform_3(%arg0: i32) -> (i32, i32) {
    %c0_i32 = arith.constant 0 : i32
    %c0_i32_0 = arith.constant 0 : i32
    return %arg0, %c0_i32 : i32, i32
  }
}

</mosaic_0001>

<bundles_post_ra>
// kernel: tpu_custom_call.1
= control target key start
LH: loop header
LB: loop body
LE: loop exit
PB: predicated region body
PF: predicated region fallthrough
CT: control target
= control target key end

     0   :  { %8 = vsyncpa [#allocation3], 0  ;;  %s1191_s0 = inlined_call_operand.hbm [shape: bf16[128,128], index: 0, kind: input, shape index: {}]   ;;  %s1192_s1 = inlined_call_operand.hbm [shape: bf16[128,512], index: 1, kind: input, shape index: {}]   ;;  %s1193_s2 = inlined_call_operand.vmem [shape: f32[1,512], index: 2, kind: input, shape index: {}]   ;;  %s1194_s3 = inlined_call_operand.hbm [shape: bf16[128,512], index: 3, kind: output, shape index: {}]  }
   0x1   :  { %9 = vsyncpa [#allocation6], 0 }
   0x2   :  { %10 = vsyncpa [#allocation4], 0  ;;  %s1030_s12 = smov [#allocation2]   ;;  %s958_s16 = scalar_lea.hbm %s1191_s0, 1024 }
   0x3   :  { %s16_s13 = sshll.u32 %s1030_s12, 4  ;;  %p959_p0 = scmp.ne.s32.totalorder %s1191_s0, %s958_s16  ;;  %s17_s13 = int_to_ptr.vmem [resolvable:$true] %s16_s13 }
   0x4   :  { %p962_p1 = scmp.lt.u32.totalorder %s958_s16, %s1191_s0 }
   0x6   :  { %p964_p2 = pnand %p962_p1, %p959_p0 }
   0x8   :  { %967 = shalt.err (!%p964_p2)
}
   0x9   :  { %s968_s21 = scalar_lea.vmem %s17_s13, 1024  ;;  %p973_p4 = scmp.lt.s32.totalorder %s17_s13, %s17_s13 }
   0xa   :  { %p969_p3 = scmp.ne.s32.totalorder %s17_s13, %s968_s21  ;;  %p974_p5 = scmp.lt.s32.totalorder %s968_s21, %s968_s21 }
   0xc   :  { %p975_p6 = por %p974_p5, %p973_p4 }
   0xe   :  { %p976_p7 = pnand %p975_p6, %p969_p3 }
  0x10   :  { %979 = shalt.err (!%p976_p7)
}
  0x11   :  { %s1031_s22 = smov 64   ;;  %s1032_s23 = smov 4  }
  0x12   :  { %22 = dma.hbm_to_vmem [thread:$0]  %s1191_s0, 1024, %s17_s13, [#allocation3], %s1031_s22, %s1031_s22, %s1032_s23  }
  0x13   :  { %s1033_s26 = smov [#allocation5]   ;;  %s980_s30 = scalar_lea.hbm %s1192_s1, 4096 }
  0x14   :  { %s28_s27 = sshll.u32 %s1033_s26, 4  ;;  %p981_p8 = scmp.ne.s32.totalorder %s1192_s1, %s980_s30  ;;  %s29_s27 = int_to_ptr.vmem [resolvable:$true] %s28_s27 }
  0x15   :  { %p984_p9 = scmp.lt.u32.totalorder %s980_s30, %s1192_s1 }
  0x17   :  { %p986_p10 = pnand %p984_p9, %p981_p8 }
  0x19   :  { %989 = shalt.err (!%p986_p10)
}
  0x1a   :  { %s990_s8 = scalar_lea.vmem %s29_s27, 4096  ;;  %p995_p12 = scmp.lt.s32.totalorder %s29_s27, %s29_s27 }
  0x1b   :  { %p991_p11 = scmp.ne.s32.totalorder %s29_s27, %s990_s8  ;;  %p996_p13 = scmp.lt.s32.totalorder %s990_s8, %s990_s8 }
  0x1d   :  { %p997_p0 = por %p996_p13, %p995_p12 }
  0x1f   :  { %p998_p1 = pnand %p997_p0, %p991_p11 }
  0x21   :  { %1001 = shalt.err (!%p998_p1)
}
  0x22   :  { %s1034_s0 = smov 256   ;;  %s1035_s9 = smov 16  }
  0x23   :  { %34 = dma.hbm_to_vmem [thread:$0]  %s1192_s1, 4096, %s29_s27, [#allocation6], %s1034_s0, %s1034_s0, %s1035_s9  }
  0x24   :  { %1024 = dma.done.wait [#allocation3], 1024  }
  0x25   :  { %1025 = vsyncadd [#allocation3], 4294966272 }
  0x26   :  { %1026 = dma.done.wait [#allocation6], 4096  }
  0x27   :  { %1027 = vsyncadd [#allocation6], 4294963200  ;;  %v1036_v0 = vmov 0   ;;  %v902_v1 = vld [vmem:[#allocation5 + $0x4] ss:$16 sps:$4 sm:$0xff]   ;;  %v951_v34 = vld [vmem:[#allocation2 + $0x8] sm:$0xff]   ;;  %v94_v41 = vlaneseq }
  0x28   :  { %354 = vmatprep.mubr.bf16.mxu0 %v1036_v0  ;;  %467 = vmatprep.mubr.bf16.mxu1 %v1036_v0  ;;  %v904_v2 = vld [vmem:[#allocation5 + $0xc] ss:$16 sps:$4 sm:$0xff]   ;;  %v906_v3 = vld [vmem:[#allocation5] ss:$16 sps:$4 sm:$0xff]   ;;  %v907_v4 = vld [vmem:[#allocation5 + $0x8] ss:$16 sps:$4 sm:$0xff]  }
  0x29   :  { %322 = vmatprep.subr.bf16.mxu0 %v902_v1  ;;  %435 = vmatprep.subr.bf16.mxu1 %v904_v2  ;;  %v908_v5 = vld [vmem:[#allocation5 + $0x24] ss:$16 sps:$4 sm:$0xff]   ;;  %v910_v6 = vld [vmem:[#allocation5 + $0x2c] ss:$16 sps:$4 sm:$0xff]   ;;  %v912_v7 = vld [vmem:[#allocation5 + $0x20] ss:$16 sps:$4 sm:$0xff]  }
  0x2a   :  { %323 = vmatpush1.bf16.msra.mxu0 %v906_v3  ;;  %436 = vmatpush1.bf16.msra.mxu1 %v907_v4  ;;  %v913_v8 = vld [vmem:[#allocation5 + $0x28] ss:$16 sps:$4 sm:$0xff]   ;;  %v914_v9 = vld [vmem:[#allocation5 + $0x44] ss:$16 sps:$4 sm:$0xff]   ;;  %v916_v10 = vld [vmem:[#allocation5 + $0x4c] ss:$16 sps:$4 sm:$0xff]  }
  0x2b   :  { %324 = vmatprep.subr.bf16.mxu0 %v908_v5  ;;  %437 = vmatprep.subr.bf16.mxu1 %v910_v6  ;;  %v918_v11 = vld [vmem:[#allocation5 + $0x40] ss:$16 sps:$4 sm:$0xff]   ;;  %v919_v12 = vld [vmem:[#allocation5 + $0x48] ss:$16 sps:$4 sm:$0xff]   ;;  %v920_v13 = vld [vmem:[#allocation5 + $0x64] ss:$16 sps:$4 sm:$0xff]  }
  0x2c   :  { %v922_v14 = vld [vmem:[#allocation5 + $0x6c] ss:$16 sps:$4 sm:$0xff]   ;;  %v924_v15 = vld [vmem:[#allocation5 + $0x60] ss:$16 sps:$4 sm:$0xff]   ;;  %v925_v16 = vld [vmem:[#allocation5 + $0x68] ss:$16 sps:$4 sm:$0xff]  }
  0x2d   :  { %v926_v17 = vld [vmem:[#allocation5 + $0x84] ss:$16 sps:$4 sm:$0xff]   ;;  %v928_v18 = vld [vmem:[#allocation5 + $0x8c] ss:$16 sps:$4 sm:$0xff]   ;;  %v930_v19 = vld [vmem:[#allocation5 + $0x80] ss:$16 sps:$4 sm:$0xff]  }
  0x2e   :  { %325 = vmatpush1.bf16.msra.mxu0 %v912_v7  ;;  %438 = vmatpush1.bf16.msra.mxu1 %v913_v8  ;;  %v931_v20 = vld [vmem:[#allocation5 + $0x88] ss:$16 sps:$4 sm:$0xff]   ;;  %v932_v21 = vld [vmem:[#allocation5 + $0xa4] ss:$16 sps:$4 sm:$0xff]   ;;  %v934_v22 = vld [vmem:[#allocation5 + $0xac] ss:$16 sps:$4 sm:$0xff]  }
  0x2f   :  { %326 = vmatprep.subr.bf16.mxu0 %v914_v9  ;;  %439 = vmatprep.subr.bf16.mxu1 %v916_v10  ;;  %v936_v23 = vld [vmem:[#allocation5 + $0xa0] ss:$16 sps:$4 sm:$0xff]   ;;  %v937_v24 = vld [vmem:[#allocation5 + $0xa8] ss:$16 sps:$4 sm:$0xff]   ;;  %v938_v25 = vld [vmem:[#allocation5 + $0xc4] ss:$16 sps:$4 sm:$0xff]  }
  0x30   :  { %v940_v26 = vld [vmem:[#allocation5 + $0xcc] ss:$16 sps:$4 sm:$0xff]   ;;  %v942_v27 = vld [vmem:[#allocation5 + $0xc0] ss:$16 sps:$4 sm:$0xff]   ;;  %v943_v28 = vld [vmem:[#allocation5 + $0xc8] ss:$16 sps:$4 sm:$0xff]  }
  0x31   :  { %v944_v29 = vld [vmem:[#allocation5 + $0xe4] ss:$16 sps:$4 sm:$0xff]   ;;  %v946_v30 = vld [vmem:[#allocation5 + $0xec] ss:$16 sps:$4 sm:$0xff]   ;;  %v948_v31 = vld [vmem:[#allocation5 + $0xe0] ss:$16 sps:$4 sm:$0xff]  }
  0x32   :  { %327 = vmatpush1.bf16.msra.mxu0 %v918_v11  ;;  %440 = vmatpush1.bf16.msra.mxu1 %v919_v12  ;;  %v949_v32 = vld [vmem:[#allocation5 + $0xe8] ss:$16 sps:$4 sm:$0xff]   ;;  %v950_v33 = vld [vmem:[#allocation2] sm:$0xff]   ;;  %v952_v35 = vld [vmem:[#allocation2 + $0x10] sm:$0xff]   ;;  %v95_v42 = vshrl.u32 %v94_v41, 7 }
  0x33   :  { %328 = vmatprep.subr.bf16.mxu0 %v920_v13  ;;  %441 = vmatprep.subr.bf16.mxu1 %v922_v14  ;;  %v953_v36 = vld [vmem:[#allocation2 + $0x18] sm:$0xff]   ;;  %v954_v37 = vld [vmem:[#allocation2 + $0x20] sm:$0xff]   ;;  %v955_v38 = vld [vmem:[#allocation2 + $0x28] sm:$0xff]  }
  0x34   :  { %v956_v39 = vld [vmem:[#allocation2 + $0x30] sm:$0xff]   ;;  %v957_v40 = vld [vmem:[#allocation2 + $0x38] sm:$0xff]   ;;  %v96_v43 = vsub.s32 0, %v95_v42  ;;  %v104_v44 = vsub.s32 2, %v95_v42  ;;  %v92_v45 = vld [vmem:[%s1193_s2] sm:$0xf] }
  0x35   :  { %v100_v46 = vsub.s32 1, %v95_v42  ;;  %v108_v47 = vsub.s32 3, %v95_v42  ;;  %s1037_s2 = smov [#allocation7]  }
  0x36   :  { %329 = vmatpush1.bf16.msra.mxu0 %v924_v15  ;;  %442 = vmatpush1.bf16.msra.mxu1 %v925_v16  ;;  %v1104_v48 = vrot.slane %v92_v45, %v96_v43  ;;  %v1106_v49 = vrot.slane %v92_v45, %v104_v44  ;;  %s777_s13 = sshll.u32 %s1037_s2, 4  ;;  %s778_s13 = int_to_ptr.vmem [resolvable:$true] %s777_s13 }
  0x37   :  { %330 = vmatprep.subr.bf16.mxu0 %v926_v17  ;;  %443 = vmatprep.subr.bf16.mxu1 %v928_v18  ;;  %v1108_v50 = vrot.slane %v92_v45, %v100_v46  ;;  %v1110_v51 = vrot.slane %v92_v45, %v108_v47  ;;  %s1002_s14 = scalar_lea.vmem %s778_s13, 4096  ;;  %p1007_p3 = scmp.lt.s32.totalorder %s778_s13, %s778_s13 }
  0x38   :  { %p1003_p2 = scmp.ne.s32.totalorder %s778_s13, %s1002_s14  ;;  %p1008_p4 = scmp.lt.s32.totalorder %s1002_s14, %s1002_s14 }
  0x3a   :  { %331 = vmatpush1.bf16.msra.mxu0 %v930_v19  ;;  %444 = vmatpush1.bf16.msra.mxu1 %v931_v20  ;;  %p1009_p5 = por %p1008_p4, %p1007_p3 }
  0x3b   :  { %332 = vmatprep.subr.bf16.mxu0 %v932_v21  ;;  %445 = vmatprep.subr.bf16.mxu1 %v934_v22 }
  0x3c   :  { %p1010_p6 = pnand %p1009_p5, %p1003_p2 }
  0x3e   :  { %333 = vmatpush1.bf16.msra.mxu0 %v936_v23  ;;  %446 = vmatpush1.bf16.msra.mxu1 %v937_v24 }
  0x3f   :  { %334 = vmatprep.subr.bf16.mxu0 %v938_v25  ;;  %447 = vmatprep.subr.bf16.mxu1 %v940_v26 }
  0x42   :  { %335 = vmatpush1.bf16.msra.mxu0 %v942_v27  ;;  %448 = vmatpush1.bf16.msra.mxu1 %v943_v28 }
  0x43   :  { %336 = vmatprep.subr.bf16.mxu0 %v944_v29  ;;  %449 = vmatprep.subr.bf16.mxu1 %v946_v30 }
  0x46   :  { %337 = vmatpush1.bf16.msra.mxu0 %v948_v31  ;;  %450 = vmatpush1.bf16.msra.mxu1 %v949_v32 }
  0x49   :  { %355 = vmatmul.mubr.bf16.vlgmr.msra.gmra.mrb[0].mxu0 %v950_v33  ;;  %468 = vmatmul.mubr.bf16.vlgmr.msra.gmra.mrb[0].mxu1 %v950_v33 }
  0x4a   :  { %364 = vmatprep.mubr.bf16.mxu0 %v1036_v0  ;;  %477 = vmatprep.mubr.bf16.mxu1 %v1036_v0 }
  0x51   :  { %365 = vmatmul.mubr.bf16.gmra.mrb[4].mxu0 %v951_v34  ;;  %478 = vmatmul.mubr.bf16.gmra.mrb[4].mxu1 %v951_v34 }
  0x52   :  { %374 = vmatprep.mubr.bf16.mxu0 %v1036_v0  ;;  %487 = vmatprep.mubr.bf16.mxu1 %v1036_v0 }
  0x59   :  { %375 = vmatmul.mubr.bf16.gmra.mrb[8].mxu0 %v952_v35  ;;  %488 = vmatmul.mubr.bf16.gmra.mrb[8].mxu1 %v952_v35 }
  0x5a   :  { %384 = vmatprep.mubr.bf16.mxu0 %v1036_v0  ;;  %497 = vmatprep.mubr.bf16.mxu1 %v1036_v0 }
  0x61   :  { %385 = vmatmul.mubr.bf16.gmra.mrb[12].mxu0 %v953_v36  ;;  %498 = vmatmul.mubr.bf16.gmra.mrb[12].mxu1 %v953_v36 }
  0x62   :  { %394 = vmatprep.mubr.bf16.mxu0 %v1036_v0  ;;  %507 = vmatprep.mubr.bf16.mxu1 %v1036_v0 }
  0x69   :  { %395 = vmatmul.mubr.bf16.gmra.mrb[16].mxu0 %v954_v37  ;;  %508 = vmatmul.mubr.bf16.gmra.mrb[16].mxu1 %v954_v37 }
  0x6a   :  { %404 = vmatprep.mubr.bf16.mxu0 %v1036_v0  ;;  %517 = vmatprep.mubr.bf16.mxu1 %v1036_v0 }
  0x71   :  { %405 = vmatmul.mubr.bf16.gmra.mrb[20].mxu0 %v955_v38  ;;  %518 = vmatmul.mubr.bf16.gmra.mrb[20].mxu1 %v955_v38 }
  0x72   :  { %414 = vmatprep.mubr.bf16.mxu0 %v1036_v0  ;;  %527 = vmatprep.mubr.bf16.mxu1 %v1036_v0 }
  0x79   :  { %415 = vmatmul.mubr.bf16.gmra.mrb[24].mxu0 %v956_v39  ;;  %528 = vmatmul.mubr.bf16.gmra.mrb[24].mxu1 %v956_v39 }
  0x7a   :  { %424 = vmatprep.mubr.bf16.mxu0 %v1036_v0  ;;  %537 = vmatprep.mubr.bf16.mxu1 %v1036_v0 }
  0x81   :  { %425 = vmatmul.mubr.bf16.gmra.mrb[28].mxu0 %v957_v40  ;;  %538 = vmatmul.mubr.bf16.gmra.mrb[28].mxu1 %v957_v40 }
 0x11c   :  { %v356_v52 = vpop.f32.mrb[0].mxu0  ;;  %v469_v53 = vpop.f32.mrb[0].mxu1 }
 0x11d   :  { %v357_v54 = vadd.f32 %v356_v52, %v1104_v48  ;;  %v470_v55 = vadd.f32 %v469_v53, %v1106_v49  ;;  %v358_v56 = vpop.f32.mrb[1].mxu0  ;;  %v471_v57 = vpop.f32.mrb[1].mxu1 }
 0x11e   :  { %v359_v58 = vadd.f32 %v358_v56, %v1108_v50  ;;  %v472_v59 = vadd.f32 %v471_v57, %v1110_v51  ;;  %v360_v60 = vpop.f32.mrb[2].mxu0  ;;  %v473_v61 = vpop.f32.mrb[2].mxu1 }
 0x11f   :  { %v361_v62 = vadd.f32 %v360_v60, %v1104_v48  ;;  %v474_v63 = vadd.f32 %v473_v61, %v1106_v49  ;;  %v362_v0 = vpop.f32.mrb[3].mxu0  ;;  %v475_v1 = vpop.f32.mrb[3].mxu1 }
 0x120   :  { %v862_v2 = vpack.c.bf16 %v359_v58, %v357_v54  ;;  %v863_v3 = vpack.c.bf16 %v472_v59, %v470_v55  ;;  %v363_v4 = vadd.f32 %v362_v0, %v1108_v50  ;;  %v476_v5 = vadd.f32 %v475_v1, %v1110_v51 }
 0x122   :  { %740 = vst [vmem:[#allocation7] sm:$0xff] %v862_v2  ;;  %741 = vst [vmem:[#allocation7 + $0x8] sm:$0xff] %v863_v3  ;;  %v864_v6 = vpack.c.bf16 %v363_v4, %v361_v62  ;;  %v865_v7 = vpack.c.bf16 %v476_v5, %v474_v63 }
 0x124   :  { %742 = vst [vmem:[#allocation7 + $0x10] sm:$0xff] %v864_v6  ;;  %743 = vst [vmem:[#allocation7 + $0x18] sm:$0xff] %v865_v7  ;;  %v366_v8 = vpop.f32.mrb[4].mxu0  ;;  %v479_v9 = vpop.f32.mrb[4].mxu1 }
 0x125   :  { %v367_v10 = vadd.f32 %v366_v8, %v1104_v48  ;;  %v480_v11 = vadd.f32 %v479_v9, %v1106_v49  ;;  %v368_v12 = vpop.f32.mrb[5].mxu0  ;;  %v481_v13 = vpop.f32.mrb[5].mxu1 }
 0x126   :  { %v369_v14 = vadd.f32 %v368_v12, %v1108_v50  ;;  %v482_v15 = vadd.f32 %v481_v13, %v1110_v51  ;;  %v370_v16 = vpop.f32.mrb[6].mxu0  ;;  %v483_v17 = vpop.f32.mrb[6].mxu1 }
 0x127   :  { %v371_v18 = vadd.f32 %v370_v16, %v1104_v48  ;;  %v484_v19 = vadd.f32 %v483_v17, %v1106_v49  ;;  %v372_v20 = vpop.f32.mrb[7].mxu0  ;;  %v485_v21 = vpop.f32.mrb[7].mxu1 }
 0x128   :  { %v866_v22 = vpack.c.bf16 %v369_v14, %v367_v10  ;;  %v867_v23 = vpack.c.bf16 %v482_v15, %v480_v11  ;;  %v373_v24 = vadd.f32 %v372_v20, %v1108_v50  ;;  %v486_v25 = vadd.f32 %v485_v21, %v1110_v51 }
 0x12a   :  { %744 = vst [vmem:[#allocation7 + $0x20] sm:$0xff] %v866_v22  ;;  %745 = vst [vmem:[#allocation7 + $0x28] sm:$0xff] %v867_v23  ;;  %v868_v26 = vpack.c.bf16 %v373_v24, %v371_v18  ;;  %v869_v27 = vpack.c.bf16 %v486_v25, %v484_v19 }
 0x12c   :  { %746 = vst [vmem:[#allocation7 + $0x30] sm:$0xff] %v868_v26  ;;  %747 = vst [vmem:[#allocation7 + $0x38] sm:$0xff] %v869_v27  ;;  %v376_v28 = vpop.f32.mrb[8].mxu0  ;;  %v489_v29 = vpop.f32.mrb[8].mxu1 }
 0x12d   :  { %v377_v30 = vadd.f32 %v376_v28, %v1104_v48  ;;  %v490_v31 = vadd.f32 %v489_v29, %v1106_v49  ;;  %v378_v32 = vpop.f32.mrb[9].mxu0  ;;  %v491_v33 = vpop.f32.mrb[9].mxu1 }
 0x12e   :  { %v379_v34 = vadd.f32 %v378_v32, %v1108_v50  ;;  %v492_v35 = vadd.f32 %v491_v33, %v1110_v51  ;;  %v380_v36 = vpop.f32.mrb[10].mxu0  ;;  %v493_v37 = vpop.f32.mrb[10].mxu1 }
 0x12f   :  { %v381_v38 = vadd.f32 %v380_v36, %v1104_v48  ;;  %v494_v39 = vadd.f32 %v493_v37, %v1106_v49  ;;  %v382_v40 = vpop.f32.mrb[11].mxu0  ;;  %v495_v41 = vpop.f32.mrb[11].mxu1 }
 0x130   :  { %v870_v42 = vpack.c.bf16 %v379_v34, %v377_v30  ;;  %v871_v43 = vpack.c.bf16 %v492_v35, %v490_v31  ;;  %v383_v44 = vadd.f32 %v382_v40, %v1108_v50  ;;  %v496_v45 = vadd.f32 %v495_v41, %v1110_v51 }
 0x132   :  { %748 = vst [vmem:[#allocation7 + $0x40] sm:$0xff] %v870_v42  ;;  %749 = vst [vmem:[#allocation7 + $0x48] sm:$0xff] %v871_v43  ;;  %v872_v46 = vpack.c.bf16 %v383_v44, %v381_v38  ;;  %v873_v47 = vpack.c.bf16 %v496_v45, %v494_v39 }
 0x134   :  { %750 = vst [vmem:[#allocation7 + $0x50] sm:$0xff] %v872_v46  ;;  %751 = vst [vmem:[#allocation7 + $0x58] sm:$0xff] %v873_v47  ;;  %v386_v52 = vpop.f32.mrb[12].mxu0  ;;  %v499_v53 = vpop.f32.mrb[12].mxu1 }
 0x135   :  { %v387_v54 = vadd.f32 %v386_v52, %v1104_v48  ;;  %v500_v55 = vadd.f32 %v499_v53, %v1106_v49  ;;  %v388_v56 = vpop.f32.mrb[13].mxu0  ;;  %v501_v57 = vpop.f32.mrb[13].mxu1 }
 0x136   :  { %v389_v58 = vadd.f32 %v388_v56, %v1108_v50  ;;  %v502_v59 = vadd.f32 %v501_v57, %v1110_v51  ;;  %v390_v60 = vpop.f32.mrb[14].mxu0  ;;  %v503_v61 = vpop.f32.mrb[14].mxu1 }
 0x137   :  { %v391_v62 = vadd.f32 %v390_v60, %v1104_v48  ;;  %v504_v63 = vadd.f32 %v503_v61, %v1106_v49  ;;  %v392_v0 = vpop.f32.mrb[15].mxu0  ;;  %v505_v1 = vpop.f32.mrb[15].mxu1 }
 0x138   :  { %v874_v2 = vpack.c.bf16 %v389_v58, %v387_v54  ;;  %v875_v3 = vpack.c.bf16 %v502_v59, %v500_v55  ;;  %v393_v4 = vadd.f32 %v392_v0, %v1108_v50  ;;  %v506_v5 = vadd.f32 %v505_v1, %v1110_v51 }
 0x13a   :  { %752 = vst [vmem:[#allocation7 + $0x60] sm:$0xff] %v874_v2  ;;  %753 = vst [vmem:[#allocation7 + $0x68] sm:$0xff] %v875_v3  ;;  %v876_v6 = vpack.c.bf16 %v393_v4, %v391_v62  ;;  %v877_v7 = vpack.c.bf16 %v506_v5, %v504_v63 }
 0x13c   :  { %754 = vst [vmem:[#allocation7 + $0x70] sm:$0xff] %v876_v6  ;;  %755 = vst [vmem:[#allocation7 + $0x78] sm:$0xff] %v877_v7  ;;  %v396_v8 = vpop.f32.mrb[16].mxu0  ;;  %v509_v9 = vpop.f32.mrb[16].mxu1 }
 0x13d   :  { %v397_v10 = vadd.f32 %v396_v8, %v1104_v48  ;;  %v510_v11 = vadd.f32 %v509_v9, %v1106_v49  ;;  %v398_v12 = vpop.f32.mrb[17].mxu0  ;;  %v511_v13 = vpop.f32.mrb[17].mxu1 }
 0x13e   :  { %v399_v14 = vadd.f32 %v398_v12, %v1108_v50  ;;  %v512_v15 = vadd.f32 %v511_v13, %v1110_v51  ;;  %v400_v16 = vpop.f32.mrb[18].mxu0  ;;  %v513_v17 = vpop.f32.mrb[18].mxu1 }
 0x13f   :  { %v401_v18 = vadd.f32 %v400_v16, %v1104_v48  ;;  %v514_v19 = vadd.f32 %v513_v17, %v1106_v49  ;;  %v402_v20 = vpop.f32.mrb[19].mxu0  ;;  %v515_v21 = vpop.f32.mrb[19].mxu1 }
 0x140   :  { %v878_v22 = vpack.c.bf16 %v399_v14, %v397_v10  ;;  %v879_v23 = vpack.c.bf16 %v512_v15, %v510_v11  ;;  %v403_v24 = vadd.f32 %v402_v20, %v1108_v50  ;;  %v516_v25 = vadd.f32 %v515_v21, %v1110_v51 }
 0x142   :  { %756 = vst [vmem:[#allocation7 + $0x80] sm:$0xff] %v878_v22  ;;  %757 = vst [vmem:[#allocation7 + $0x88] sm:$0xff] %v879_v23  ;;  %v880_v26 = vpack.c.bf16 %v403_v24, %v401_v18  ;;  %v881_v27 = vpack.c.bf16 %v516_v25, %v514_v19 }
 0x144   :  { %758 = vst [vmem:[#allocation7 + $0x90] sm:$0xff] %v880_v26  ;;  %759 = vst [vmem:[#allocation7 + $0x98] sm:$0xff] %v881_v27  ;;  %v406_v28 = vpop.f32.mrb[20].mxu0  ;;  %v519_v29 = vpop.f32.mrb[20].mxu1 }
 0x145   :  { %v407_v30 = vadd.f32 %v406_v28, %v1104_v48  ;;  %v520_v31 = vadd.f32 %v519_v29, %v1106_v49  ;;  %v408_v32 = vpop.f32.mrb[21].mxu0  ;;  %v521_v33 = vpop.f32.mrb[21].mxu1 }
 0x146   :  { %v409_v34 = vadd.f32 %v408_v32, %v1108_v50  ;;  %v522_v35 = vadd.f32 %v521_v33, %v1110_v51  ;;  %v410_v36 = vpop.f32.mrb[22].mxu0  ;;  %v523_v37 = vpop.f32.mrb[22].mxu1 }
 0x147   :  { %v411_v38 = vadd.f32 %v410_v36, %v1104_v48  ;;  %v524_v39 = vadd.f32 %v523_v37, %v1106_v49  ;;  %v412_v40 = vpop.f32.mrb[23].mxu0  ;;  %v525_v41 = vpop.f32.mrb[23].mxu1 }
 0x148   :  { %v882_v42 = vpack.c.bf16 %v409_v34, %v407_v30  ;;  %v883_v43 = vpack.c.bf16 %v522_v35, %v520_v31  ;;  %v413_v44 = vadd.f32 %v412_v40, %v1108_v50  ;;  %v526_v45 = vadd.f32 %v525_v41, %v1110_v51 }
 0x14a   :  { %760 = vst [vmem:[#allocation7 + $0xa0] sm:$0xff] %v882_v42  ;;  %761 = vst [vmem:[#allocation7 + $0xa8] sm:$0xff] %v883_v43  ;;  %v884_v46 = vpack.c.bf16 %v413_v44, %v411_v38  ;;  %v885_v47 = vpack.c.bf16 %v526_v45, %v524_v39 }
 0x14c   :  { %762 = vst [vmem:[#allocation7 + $0xb0] sm:$0xff] %v884_v46  ;;  %763 = vst [vmem:[#allocation7 + $0xb8] sm:$0xff] %v885_v47  ;;  %v416_v52 = vpop.f32.mrb[24].mxu0  ;;  %v529_v53 = vpop.f32.mrb[24].mxu1 }
 0x14d   :  { %v417_v54 = vadd.f32 %v416_v52, %v1104_v48  ;;  %v530_v55 = vadd.f32 %v529_v53, %v1106_v49  ;;  %v418_v56 = vpop.f32.mrb[25].mxu0  ;;  %v531_v57 = vpop.f32.mrb[25].mxu1 }
 0x14e   :  { %v419_v58 = vadd.f32 %v418_v56, %v1108_v50  ;;  %v532_v59 = vadd.f32 %v531_v57, %v1110_v51  ;;  %v420_v60 = vpop.f32.mrb[26].mxu0  ;;  %v533_v61 = vpop.f32.mrb[26].mxu1 }
 0x14f   :  { %v421_v62 = vadd.f32 %v420_v60, %v1104_v48  ;;  %v534_v63 = vadd.f32 %v533_v61, %v1106_v49  ;;  %v422_v0 = vpop.f32.mrb[27].mxu0  ;;  %v535_v1 = vpop.f32.mrb[27].mxu1 }
 0x150   :  { %v886_v2 = vpack.c.bf16 %v419_v58, %v417_v54  ;;  %v887_v3 = vpack.c.bf16 %v532_v59, %v530_v55  ;;  %v423_v4 = vadd.f32 %v422_v0, %v1108_v50  ;;  %v536_v5 = vadd.f32 %v535_v1, %v1110_v51 }
 0x152   :  { %764 = vst [vmem:[#allocation7 + $0xc0] sm:$0xff] %v886_v2  ;;  %765 = vst [vmem:[#allocation7 + $0xc8] sm:$0xff] %v887_v3  ;;  %v888_v6 = vpack.c.bf16 %v423_v4, %v421_v62  ;;  %v889_v7 = vpack.c.bf16 %v536_v5, %v534_v63 }
 0x154   :  { %766 = vst [vmem:[#allocation7 + $0xd0] sm:$0xff] %v888_v6  ;;  %767 = vst [vmem:[#allocation7 + $0xd8] sm:$0xff] %v889_v7  ;;  %v426_v8 = vpop.f32.mrb[28].mxu0  ;;  %v539_v9 = vpop.f32.mrb[28].mxu1 }
 0x155   :  { %v427_v10 = vadd.f32 %v426_v8, %v1104_v48  ;;  %v540_v11 = vadd.f32 %v539_v9, %v1106_v49  ;;  %v428_v12 = vpop.f32.mrb[29].mxu0  ;;  %v541_v13 = vpop.f32.mrb[29].mxu1 }
 0x156   :  { %v429_v14 = vadd.f32 %v428_v12, %v1108_v50  ;;  %v542_v15 = vadd.f32 %v541_v13, %v1110_v51  ;;  %v430_v16 = vpop.f32.mrb[30].mxu0  ;;  %v543_v17 = vpop.f32.mrb[30].mxu1 }
 0x157   :  { %v431_v18 = vadd.f32 %v430_v16, %v1104_v48  ;;  %v544_v19 = vadd.f32 %v543_v17, %v1106_v49  ;;  %v432_v20 = vpop.f32.mrb[31].mxu0  ;;  %v545_v21 = vpop.f32.mrb[31].mxu1 }
 0x158   :  { %v890_v22 = vpack.c.bf16 %v429_v14, %v427_v10  ;;  %v891_v23 = vpack.c.bf16 %v542_v15, %v540_v11  ;;  %v433_v24 = vadd.f32 %v432_v20, %v1108_v50  ;;  %v546_v25 = vadd.f32 %v545_v21, %v1110_v51 }
 0x15a   :  { %768 = vst [vmem:[#allocation7 + $0xe0] sm:$0xff] %v890_v22  ;;  %769 = vst [vmem:[#allocation7 + $0xe8] sm:$0xff] %v891_v23  ;;  %v892_v26 = vpack.c.bf16 %v433_v24, %v431_v18  ;;  %v893_v27 = vpack.c.bf16 %v546_v25, %v544_v19 }
 0x15c   :  { %770 = vst [vmem:[#allocation7 + $0xf0] sm:$0xff] %v892_v26  ;;  %771 = vst [vmem:[#allocation7 + $0xf8] sm:$0xff] %v893_v27 }
 0x15d   :  { %1013 = shalt.err (!%p1010_p6)
}
 0x15e   :  { %s1014_s17 = scalar_lea.hbm %s1194_s3, 4096 }
 0x15f   :  { %p1015_p7 = scmp.ne.s32.totalorder %s1194_s3, %s1014_s17  ;;  %p1018_p8 = scmp.lt.u32.totalorder %s1014_s17, %s1194_s3 }
 0x161   :  { %p1020_p9 = pnand %p1018_p8, %p1015_p7 }
 0x163   :  { %1023 = shalt.err (!%p1020_p9)
}
 0x164   :  { %783 = dma.vmem_to_hbm [thread:$0]  %s778_s13, 4096, %s1194_s3, [#allocation4], %s1034_s0, %s1034_s0, %s1035_s9  }
 0x165   :  { %1028 = dma.done.wait [#allocation4], 4096  }
 0x166   :  { %1029 = vsyncadd [#allocation4], 4294963200 }
 0x167   :  { %787 = vsyncpa [#allocation3], 1 }
 0x168   :  { %788 = vsyncpa [#allocation6], 1 }
 0x169   :  { %789 = vsyncpa [#allocation4], 1 }

</bundles_post_ra>
